<compile_context>
chip_gen: v7x
topology: tpu7x:2x2x1
jax: 0.10.0
libtpu: 0.0.40
codegen_flags: <defaults>
</compile_context>

<pallas_src>
import math

import jax
import jax.numpy as jnp
from jax import lax
from jax.experimental import pallas as pl
from jax.experimental.pallas import tpu as pltpu

LANES = 128
SUBLANES = 8
CHUNK = SUBLANES * LANES            # 1024: max padding granularity
TARGET_STEP_BYTES = 4 << 20         # combined (both inputs) bytes per grid step


def _num_tensorcores() -> int:
    """Best-effort TensorCores per device (2 on v7x, else 1). Safe fallback."""
    try:
        info = pltpu.get_tpu_info()
        for name in ("num_cores", "core_count", "num_tensorcores",
                     "tensorcore_count", "cores_per_chip"):
            v = getattr(info, name, None)
            if isinstance(v, int) and 1 <= v <= 8:
                return v
    except Exception:
        pass
    try:
        kind = jax.devices()[0].device_kind.lower()
        if "v7" in kind or "7x" in kind:
            return 2
    except Exception:
        pass
    return 1


def _make_kernel(alpha: float, n_elements: int, block_rows: int,
                 blocks_per_slice: int):
    inv_denom = 1.0 / (alpha + 1e-4)
    full_rows = n_elements // LANES          # rows that are entirely valid
    rem = n_elements % LANES                 # valid lanes in row `full_rows`
    grp = block_rows // SUBLANES             # vreg-rows per tile

    def kernel(pred_ref, true_ref, out_ref):
        c = pl.program_id(0)                 # slice index (parallel)
        i = pl.program_id(1)                 # row-block within slice
        b = c * blocks_per_slice + i         # global (unclamped) block index

        @pl.when(i == 0)
        def _init():
            out_ref[...] = jnp.zeros_like(out_ref)

        x = pred_ref[...].astype(jnp.float32)
        y = true_ref[...].astype(jnp.float32)

        # Stable BCE-with-logits; reuse e = exp(-|x|) for log1p and sigmoid.
        e = jnp.exp(-jnp.abs(x))
        bce = jnp.maximum(x, 0.0) - x * y + jnp.log1p(e)
        # Exact divide kept (approx reciprocal would miss the 1e-5 tolerance).
        p = jnp.where(x >= 0.0, 1.0, e) / (1.0 + e)      # == sigmoid(x)
        dx = p - y
        alpha_factor = 1.0 - jnp.exp((dx - 1.0) * inv_denom)
        loss = bce * alpha_factor

        # A block is fully valid iff every row it covers is < full_rows.
        fully_valid = (b + 1) * block_rows <= full_rows

        @pl.when(fully_valid)
        def _acc():
            out_ref[...] += loss.reshape(grp, SUBLANES, LANES).sum(axis=0)

        @pl.when(jnp.logical_not(fully_valid))
        def _acc_masked():
            # Row/lane compared separately: no *128 multiply, no i32 overflow.
            row = b * block_rows + lax.broadcasted_iota(jnp.int32, loss.shape, 0)
            lane = lax.broadcasted_iota(jnp.int32, loss.shape, 1)
            valid = (row < full_rows) | ((row == full_rows) & (lane < rem))
            masked = jnp.where(valid, loss, 0.0)
            out_ref[...] += masked.reshape(grp, SUBLANES, LANES).sum(axis=0)

    return kernel


def bce_blur_with_logits_loss(pred: jax.Array, true: jax.Array,
                              alpha: float = 0.05, *, max_block_rows=None):
    """Mean of BCE-with-logits loss modulated by the 'blur' alpha factor."""
    assert pred.shape == true.shape
    n = math.prod(pred.shape)
    assert n > 0

    pred_flat = pred.reshape(-1)
    true_flat = true.reshape(-1)

    # Pad at most one 8x128 block; copy-free whenever n % 1024 == 0.
    n_pad = (-n) % CHUNK
    if n_pad:
        pred_flat = jnp.pad(pred_flat, (0, n_pad))
        true_flat = jnp.pad(true_flat, (0, n_pad))
    rows = (n + n_pad) // LANES                          # multiple of 8
    pred2d = pred_flat.reshape(rows, LANES)
    true2d = true_flat.reshape(rows, LANES)

    # ~2 MiB per input buffer: 4096 rows f32, 8192 rows bf16.
    bytes_per_row = LANES * (pred2d.dtype.itemsize + true2d.dtype.itemsize)
    block_rows = max(SUBLANES,
                     (TARGET_STEP_BYTES // bytes_per_row) // SUBLANES * SUBLANES)
    if max_block_rows is not None:
        block_rows = min(block_rows,
                         max(SUBLANES, (max_block_rows // SUBLANES) * SUBLANES))
    block_rows = min(block_rows, rows)                   # still a multiple of 8

    total_blocks = -(-rows // block_rows)
    num_slices = max(1, min(_num_tensorcores(), total_blocks))
    blocks_per_slice = -(-total_blocks // num_slices)
    last_block = total_blocks - 1

    def in_map(c, i):
        # Clamp so over-allocated (c, i) points re-read a real block; the
        # kernel masks them to zero via the unclamped global block index.
        return (jnp.minimum(c * blocks_per_slice + i, last_block), 0)

    in_spec = pl.BlockSpec((block_rows, LANES), in_map)
    out_spec = pl.BlockSpec((None, SUBLANES, LANES), lambda c, i: (c, 0, 0))

    # 2 inputs x 2 pipeline buffers + small output/accumulator + headroom.
    vmem_limit = int(2 * block_rows * bytes_per_row + (4 << 20))
    vmem_limit = min(max(vmem_limit, 8 << 20), 32 << 20)

    kernel = _make_kernel(alpha, n, block_rows, blocks_per_slice)

    partials = pl.pallas_call(
        kernel,
        out_shape=jax.ShapeDtypeStruct((num_slices, SUBLANES, LANES), jnp.float32),
        grid_spec=pltpu.PrefetchScalarGridSpec(
            num_scalar_prefetch=0,
            grid=(num_slices, blocks_per_slice),
            in_specs=[in_spec, in_spec],
            out_specs=out_spec,
        ),
        compiler_params=pltpu.CompilerParams(
            dimension_semantics=("parallel", "arbitrary"),
            vmem_limit_bytes=vmem_limit,
        ),
    )(pred2d, true2d)

    return jnp.sum(partials) * (1.0 / n)


def _reference(pred, true, alpha=0.05):
    x = pred.astype(jnp.float32)
    y = true.astype(jnp.float32)
    bce = jnp.maximum(x, 0.0) - x * y + jnp.log1p(jnp.exp(-jnp.abs(x)))
    p = jax.nn.sigmoid(x)
    dx = p - y
    af = 1.0 - jnp.exp((dx - 1.0) / (alpha + 1e-4))
    return jnp.mean(bce * af)


if __name__ == "__main__":
    key = jax.random.PRNGKey(0)

    # 1) Primary shape implied by the module: NCHW logits + binary targets.
    #    n = 2048 (multiple of 1024) -> fully copy-free path.
    k1, k2 = jax.random.split(key)
    pred = jax.random.normal(k1, (2, 4, 16, 16), dtype=jnp.float32)
    true = (jax.random.uniform(k2, (2, 4, 16, 16)) > 0.5).astype(jnp.float32)
    loss = jax.block_until_ready(bce_blur_with_logits_loss(pred, true, alpha=0.05))
    ref = _reference(pred, true, alpha=0.05)
    assert jnp.allclose(loss, ref, rtol=1e-5, atol=1e-5), (loss, ref)

    # 2) Ragged size (n = 1155): single-block padded-tail masking.
    k3, k4 = jax.random.split(k1)
    pred2 = jax.random.normal(k3, (3, 5, 7, 11), dtype=jnp.float32)
    true2 = jax.random.uniform(k4, (3, 5, 7, 11), dtype=jnp.float32)
    loss2 = jax.block_until_ready(bce_blur_with_logits_loss(pred2, true2))
    ref2 = _reference(pred2, true2)
    assert jnp.allclose(loss2, ref2, rtol=1e-5, atol=1e-5), (loss2, ref2)

    # 3) Same ragged size with a forced small tile: exercises the multi-block
    #    pipeline *and* the ragged/masked last block (review's missing path).
    loss2b = jax.block_until_ready(
        bce_blur_with_logits_loss(pred2, true2, max_block_rows=8))
    assert jnp.allclose(loss2b, ref2, rtol=1e-5, atol=1e-5), (loss2b, ref2)

    # 4) Another ragged size with several full blocks + masked tail block.
    k5, k6 = jax.random.split(k2)
    pred4 = jax.random.normal(k5, (2, 3, 37, 53), dtype=jnp.float32)
    true4 = (jax.random.uniform(k6, (2, 3, 37, 53)) > 0.5).astype(jnp.float32)
    loss4 = jax.block_until_ready(
        bce_blur_with_logits_loss(pred4, true4, max_block_rows=32))
    ref4 = _reference(pred4, true4)
    assert jnp.allclose(loss4, ref4, rtol=1e-5, atol=1e-5), (loss4, ref4)

    # 5) Larger bf16 case: n = 640000 (multiple of 1024) -> copy-free native
    #    bf16 streaming with the dtype-scaled tile size.
    k7, k8 = jax.random.split(k5)
    pred5 = jax.random.normal(k7, (4, 16, 100, 100), dtype=jnp.bfloat16)
    true5 = (jax.random.uniform(k8, (4, 16, 100, 100)) > 0.5).astype(jnp.bfloat16)
    loss5 = jax.block_until_ready(bce_blur_with_logits_loss(pred5, true5))
    ref5 = _reference(pred5, true5)
    assert jnp.allclose(loss5, ref5, rtol=1e-4, atol=1e-4), (loss5, ref5)

    # 6) Same bf16 case with a 1024-row tile: multi-block pipeline + ragged
    #    last block on a realistic size.
    loss5b = jax.block_until_ready(
        bce_blur_with_logits_loss(pred5, true5, max_block_rows=1024))
    assert jnp.allclose(loss5b, ref5, rtol=1e-4, atol=1e-4), (loss5b, ref5)

    print("KERNEL_OK")
</pallas_src>

<mosaic_0001>
module attributes {stable_mosaic.version = 11 : i64} {
  func.func @kernel(%arg0: i32, %arg1: i32, %arg2: memref<16x128xf32, #tpu.memory_space<vmem>>, %arg3: memref<16x128xf32, #tpu.memory_space<vmem>>, %arg4: memref<1x8x128xf32, #tpu.memory_space<vmem>>) attributes {dimension_semantics = [#tpu.dimension_semantics<parallel>, #tpu.dimension_semantics<arbitrary>], iteration_bounds = array<i64: 1, 1>, scalar_prefetch = 0 : i64, scratch_operands = 0 : i64, tpu.core_type = #tpu.core_type<tc>, window_params = [{transform_indices = @transform_0, window_bounds = array<i64: 16, 128>}, {transform_indices = @transform_1, window_bounds = array<i64: 16, 128>}, {transform_indices = @transform_2, window_bounds = array<i64: 1, 8, 128>}]} {
    %c1_i32 = arith.constant 1 : i32
    %0 = arith.muli %arg0, %c1_i32 : i32
    %1 = arith.addi %0, %arg1 : i32
    %c0_i32 = arith.constant 0 : i32
    %2 = arith.cmpi eq, %arg1, %c0_i32 : i32
    %3 = arith.extui %2 : i1 to i32
    %c0_i32_0 = arith.constant 0 : i32
    %4 = arith.cmpi ne, %3, %c0_i32_0 : i32
    scf.if %4 {
      %cst_15 = arith.constant 0.000000e+00 : f32
      %41 = vector.broadcast %cst_15 : f32 to vector<8x128xf32>
      %c0_16 = arith.constant 0 : index
      %c0_17 = arith.constant 0 : index
      %c0_18 = arith.constant 0 : index
      %42 = vector.load %arg4[%c0_16, %c0_17, %c0_18] : memref<1x8x128xf32, #tpu.memory_space<vmem>>, vector<1x8x128xf32>
      %43 = vector.shape_cast %42 : vector<1x8x128xf32> to vector<8x128xf32>
      %44 = vector.shape_cast %41 : vector<8x128xf32> to vector<1x8x128xf32>
      tpu.vector_store %arg4[%c0_16, %c0_17, %c0_18], %44 {strides = array<i32>} : memref<1x8x128xf32, #tpu.memory_space<vmem>>, vector<1x8x128xf32>,
    } else {
    }
    %c0 = arith.constant 0 : index
    %c0_1 = arith.constant 0 : index
    %5 = vector.load %arg2[%c0, %c0_1] : memref<16x128xf32, #tpu.memory_space<vmem>>, vector<16x128xf32>
    %c0_2 = arith.constant 0 : index
    %c0_3 = arith.constant 0 : index
    %6 = vector.load %arg3[%c0_2, %c0_3] : memref<16x128xf32, #tpu.memory_space<vmem>>, vector<16x128xf32>
    %7 = math.absf %5 : vector<16x128xf32>
    %cst = arith.constant 0.000000e+00 : f32
    %8 = vector.broadcast %cst : f32 to vector<16x128xf32>
    %9 = arith.subf %8, %7 : vector<16x128xf32>
    %10 = math.exp %9 : vector<16x128xf32>
    %cst_4 = arith.constant 0.000000e+00 : f32
    %11 = vector.broadcast %cst_4 : f32 to vector<16x128xf32>
    %12 = arith.maximumf %5, %11 : vector<16x128xf32>
    %13 = arith.mulf %5, %6 : vector<16x128xf32>
    %14 = arith.subf %12, %13 : vector<16x128xf32>
    %15 = math.log1p %10 : vector<16x128xf32>
    %16 = arith.addf %14, %15 : vector<16x128xf32>
    %cst_5 = arith.constant 0.000000e+00 : f32
    %17 = vector.broadcast %cst_5 : f32 to vector<16x128xf32>
    %18 = arith.cmpf oge, %5, %17 : vector<16x128xf32>
    %cst_6 = arith.constant 1.000000e+00 : f32
    %19 = vector.broadcast %cst_6 : f32 to vector<16x128xf32>
    %20 = arith.select %18, %19, %10 : vector<16x128xi1>, vector<16x128xf32>
    %cst_7 = arith.constant 1.000000e+00 : f32
    %21 = vector.broadcast %cst_7 : f32 to vector<16x128xf32>
    %22 = arith.addf %21, %10 : vector<16x128xf32>
    %23 = arith.divf %20, %22 : vector<16x128xf32>
    %24 = arith.subf %23, %6 : vector<16x128xf32>
    %cst_8 = arith.constant 1.000000e+00 : f32
    %25 = vector.broadcast %cst_8 : f32 to vector<16x128xf32>
    %26 = arith.subf %24, %25 : vector<16x128xf32>
    %cst_9 = arith.constant 19.9600792 : f32
    %27 = vector.broadcast %cst_9 : f32 to vector<16x128xf32>
    %28 = arith.mulf %26, %27 : vector<16x128xf32>
    %29 = math.exp %28 : vector<16x128xf32>
    %cst_10 = arith.constant 1.000000e+00 : f32
    %30 = vector.broadcast %cst_10 : f32 to vector<16x128xf32>
    %31 = arith.subf %30, %29 : vector<16x128xf32>
    %32 = arith.mulf %16, %31 : vector<16x128xf32>
    %c1_i32_11 = arith.constant 1 : i32
    %33 = arith.addi %1, %c1_i32_11 : i32
    %c16_i32 = arith.constant 16 : i32
    %34 = arith.muli %33, %c16_i32 : i32
    %c16_i32_12 = arith.constant 16 : i32
    %35 = arith.cmpi sle, %34, %c16_i32_12 : i32
    %36 = arith.extui %35 : i1 to i32
    %c0_i32_13 = arith.constant 0 : i32
    %37 = arith.cmpi ne, %36, %c0_i32_13 : i32
    scf.if %37 {
      %c0_15 = arith.constant 0 : index
      %c0_16 = arith.constant 0 : index
      %c0_17 = arith.constant 0 : index
      %41 = vector.load %arg4[%c0_15, %c0_16, %c0_17] : memref<1x8x128xf32, #tpu.memory_space<vmem>>, vector<1x8x128xf32>
      %42 = vector.shape_cast %41 : vector<1x8x128xf32> to vector<8x128xf32>
      %43 = vector.shape_cast %32 : vector<16x128xf32> to vector<2x8x128xf32>
      %cst_18 = arith.constant dense<0.000000e+00> : vector<8x128xf32>
      %44 = vector.multi_reduction <add>, %43, %cst_18 [0] : vector<2x8x128xf32> to vector<8x128xf32>
      %45 = arith.addf %42, %44 : vector<8x128xf32>
      %c0_19 = arith.constant 0 : index
      %c0_20 = arith.constant 0 : index
      %c0_21 = arith.constant 0 : index
      %46 = vector.load %arg4[%c0_19, %c0_20, %c0_21] : memref<1x8x128xf32, #tpu.memory_space<vmem>>, vector<1x8x128xf32>
      %47 = vector.shape_cast %46 : vector<1x8x128xf32> to vector<8x128xf32>
      %48 = vector.shape_cast %45 : vector<8x128xf32> to vector<1x8x128xf32>
      tpu.vector_store %arg4[%c0_19, %c0_20, %c0_21], %48 {strides = array<i32>} : memref<1x8x128xf32, #tpu.memory_space<vmem>>, vector<1x8x128xf32>,
    } else {
    }
    %true = arith.constant true
    %38 = arith.xori %35, %true : i1
    %39 = arith.extui %38 : i1 to i32
    %c0_i32_14 = arith.constant 0 : i32
    %40 = arith.cmpi ne, %39, %c0_i32_14 : i32
    scf.if %40 {
      %c16_i32_15 = arith.constant 16 : i32
      %41 = arith.muli %1, %c16_i32_15 : i32
      %42 = tpu.iota {dimensions = array<i32: 0>} : vector<16x128xi32>
      %43 = vector.broadcast %41 : i32 to vector<16x128xi32>
      %44 = arith.addi %43, %42 : vector<16x128xi32>
      %45 = tpu.iota {dimensions = array<i32: 1>} : vector<16x128xi32>
      %c16_i32_16 = arith.constant 16 : i32
      %46 = vector.broadcast %c16_i32_16 : i32 to vector<16x128xi32>
      %47 = arith.cmpi slt, %44, %46 : vector<16x128xi32>
      %c16_i32_17 = arith.constant 16 : i32
      %48 = vector.broadcast %c16_i32_17 : i32 to vector<16x128xi32>
      %49 = arith.cmpi eq, %44, %48 : vector<16x128xi32>
      %c0_i32_18 = arith.constant 0 : i32
      %50 = vector.broadcast %c0_i32_18 : i32 to vector<16x128xi32>
      %51 = arith.cmpi slt, %45, %50 : vector<16x128xi32>
      %52 = arith.andi %49, %51 : vector<16x128xi1>
      %53 = arith.ori %47, %52 : vector<16x128xi1>
      %cst_19 = arith.constant 0.000000e+00 : f32
      %54 = vector.broadcast %cst_19 : f32 to vector<16x128xf32>
      %55 = arith.select %53, %32, %54 : vector<16x128xi1>, vector<16x128xf32>
      %c0_20 = arith.constant 0 : index
      %c0_21 = arith.constant 0 : index
      %c0_22 = arith.constant 0 : index
      %56 = vector.load %arg4[%c0_20, %c0_21, %c0_22] : memref<1x8x128xf32, #tpu.memory_space<vmem>>, vector<1x8x128xf32>
      %57 = vector.shape_cast %56 : vector<1x8x128xf32> to vector<8x128xf32>
      %58 = vector.shape_cast %55 : vector<16x128xf32> to vector<2x8x128xf32>
      %cst_23 = arith.constant dense<0.000000e+00> : vector<8x128xf32>
      %59 = vector.multi_reduction <add>, %58, %cst_23 [0] : vector<2x8x128xf32> to vector<8x128xf32>
      %60 = arith.addf %57, %59 : vector<8x128xf32>
      %c0_24 = arith.constant 0 : index
      %c0_25 = arith.constant 0 : index
      %c0_26 = arith.constant 0 : index
      %61 = vector.load %arg4[%c0_24, %c0_25, %c0_26] : memref<1x8x128xf32, #tpu.memory_space<vmem>>, vector<1x8x128xf32>
      %62 = vector.shape_cast %61 : vector<1x8x128xf32> to vector<8x128xf32>
      %63 = vector.shape_cast %60 : vector<8x128xf32> to vector<1x8x128xf32>
      tpu.vector_store %arg4[%c0_24, %c0_25, %c0_26], %63 {strides = array<i32>} : memref<1x8x128xf32, #tpu.memory_space<vmem>>, vector<1x8x128xf32>,
    } else {
    }
    return
  }
  func.func @transform_0(%arg0: i32, %arg1: i32) -> (i32, i32) {
    %c1_i32 = arith.constant 1 : i32
    %0 = arith.muli %arg0, %c1_i32 : i32
    %1 = arith.addi %0, %arg1 : i32
    %c0_i32 = arith.constant 0 : i32
    %2 = arith.minsi %1, %c0_i32 : i32
    %c0_i32_0 = arith.constant 0 : i32
    %c0_i32_1 = arith.constant 0 : i32
    return %2, %c0_i32_0 : i32, i32
  }
  func.func @transform_1(%arg0: i32, %arg1: i32) -> (i32, i32) {
    %c1_i32 = arith.constant 1 : i32
    %0 = arith.muli %arg0, %c1_i32 : i32
    %1 = arith.addi %0, %arg1 : i32
    %c0_i32 = arith.constant 0 : i32
    %2 = arith.minsi %1, %c0_i32 : i32
    %c0_i32_0 = arith.constant 0 : i32
    %c0_i32_1 = arith.constant 0 : i32
    return %2, %c0_i32_0 : i32, i32
  }
  func.func @transform_2(%arg0: i32, %arg1: i32) -> (i32, i32, i32) {
    %c0_i32 = arith.constant 0 : i32
    %c0_i32_0 = arith.constant 0 : i32
    %c0_i32_1 = arith.constant 0 : i32
    return %arg0, %c0_i32, %c0_i32_0 : i32, i32, i32
  }
}

</mosaic_0001>

<bundles_post_ra>
// kernel: tpu_custom_call.1
= control target key start
LH: loop header
LB: loop body
LE: loop exit
PB: predicated region body
PF: predicated region fallthrough
CT: control target
= control target key end

     0   :  { %7 = vsyncpa [#allocation3], 0  ;;  %s338_s0 = inlined_call_operand.hbm [shape: f32[16,128], index: 0, kind: input, shape index: {}]   ;;  %s339_s1 = inlined_call_operand.hbm [shape: f32[16,128], index: 1, kind: input, shape index: {}]   ;;  %s340_s2 = inlined_call_operand.hbm [shape: f32[1,8,128], index: 2, kind: output, shape index: {}]  }
   0x1   :  { %8 = vsyncpa [#allocation6], 0 }
   0x2   :  { %9 = vsyncpa [#allocation4], 0  ;;  %s282_s9 = smov [#allocation2]   ;;  %s210_s13 = scalar_lea.hbm %s338_s0, 256 }
   0x3   :  { %s21_s10 = sshll.u32 %s282_s9, 4  ;;  %p211_p0 = scmp.ne.s32.totalorder %s338_s0, %s210_s13  ;;  %s22_s10 = int_to_ptr.vmem [resolvable:$true] %s21_s10 }
   0x4   :  { %p214_p1 = scmp.lt.u32.totalorder %s210_s13, %s338_s0 }
   0x6   :  { %p216_p2 = pnand %p214_p1, %p211_p0 }
   0x8   :  { %219 = shalt.err (!%p216_p2)
}
   0x9   :  { %s220_s18 = scalar_lea.vmem %s22_s10, 256  ;;  %p225_p4 = scmp.lt.s32.totalorder %s22_s10, %s22_s10 }
   0xa   :  { %p221_p3 = scmp.ne.s32.totalorder %s22_s10, %s220_s18  ;;  %p226_p5 = scmp.lt.s32.totalorder %s220_s18, %s220_s18 }
   0xc   :  { %p227_p6 = por %p226_p5, %p225_p4 }
   0xe   :  { %p228_p7 = pnand %p227_p6, %p221_p3 }
  0x10   :  { %231 = shalt.err (!%p228_p7)
}
  0x11   :  { %s283_s19 = smov 128   ;;  %s284_s20 = smov 8  }
  0x12   :  { %27 = dma.hbm_to_vmem [thread:$0]  %s338_s0, 256, %s22_s10, [#allocation3], %s283_s19, %s283_s19, %s284_s20  }
  0x13   :  { %s285_s23 = smov [#allocation5]   ;;  %s232_s27 = scalar_lea.hbm %s339_s1, 256 }
  0x14   :  { %s39_s24 = sshll.u32 %s285_s23, 4  ;;  %p233_p8 = scmp.ne.s32.totalorder %s339_s1, %s232_s27  ;;  %s40_s24 = int_to_ptr.vmem [resolvable:$true] %s39_s24 }
  0x15   :  { %p236_p9 = scmp.lt.u32.totalorder %s232_s27, %s339_s1 }
  0x17   :  { %p238_p10 = pnand %p236_p9, %p233_p8 }
  0x19   :  { %241 = shalt.err (!%p238_p10)
}
  0x1a   :  { %s242_s4 = scalar_lea.vmem %s40_s24, 256  ;;  %p247_p12 = scmp.lt.s32.totalorder %s40_s24, %s40_s24 }
  0x1b   :  { %p243_p11 = scmp.ne.s32.totalorder %s40_s24, %s242_s4  ;;  %p248_p13 = scmp.lt.s32.totalorder %s242_s4, %s242_s4 }
  0x1d   :  { %p249_p0 = por %p248_p13, %p247_p12 }
  0x1f   :  { %p250_p1 = pnand %p249_p0, %p243_p11 }
  0x21   :  { %253 = shalt.err (!%p250_p1)
}
  0x22   :  { %45 = dma.hbm_to_vmem [thread:$0]  %s339_s1, 256, %s40_s24, [#allocation6], %s283_s19, %s283_s19, %s284_s20  }
  0x23   :  { %276 = dma.done.wait [#allocation3], 256  }
  0x24   :  { %277 = vsyncadd [#allocation3], 4294967040 }
  0x25   :  { %278 = dma.done.wait [#allocation6], 256  }
  0x26   :  { %279 = vsyncadd [#allocation6], 4294967040  ;;  %v66_v0 = vld [vmem:[#allocation2] sm:$0xff]  ;;  %v67_v1 = vld [vmem:[#allocation2 + $0x8] sm:$0xff]  ;;  %s286_s1 = smov [#allocation7]  }
  0x27   :  { %v70_v2 = vand.u32 2147483647, %v66_v0  ;;  %v71_v3 = vand.u32 2147483647, %v67_v1  ;;  %vm104_vm0 = vcmp.ge.f32.partialorder %v66_v0, 0.0  ;;  %vm105_vm1 = vcmp.ge.f32.partialorder %v67_v1, 0.0 }
  0x28   :  { %v68_v15 = vld [vmem:[#allocation5] sm:$0xff]  ;;  %v69_v17 = vld [vmem:[#allocation5 + $0x8] sm:$0xff]  ;;  %v78_v36 = vmax.f32 %v66_v0, 0.0  ;;  %v79_v38 = vmax.f32 %v67_v1, 0.0  ;;  %s172_s6 = sshll.u32 %s286_s1, 4  ;;  %s173_s6 = int_to_ptr.vmem [resolvable:$true] %s172_s6 }
  0x29   :  { %v72_v4 = vsub.f32 0.0, %v70_v2  ;;  %v73_v5 = vsub.f32 0.0, %v71_v3  ;;  %v80_v37 = vmul.f32 %v68_v15, %v66_v0  ;;  %v81_v39 = vmul.f32 %v69_v17, %v67_v1  ;;  %s254_s7 = scalar_lea.vmem %s173_s6, 128  ;;  %p259_p3 = scmp.lt.s32.totalorder %s173_s6, %s173_s6 }
  0x2a   :  { %p255_p2 = scmp.ne.s32.totalorder %s173_s6, %s254_s7  ;;  %p260_p4 = scmp.lt.s32.totalorder %s254_s7, %s254_s7 }
  0x2b   :  { %v74_v6 = vmul.f32 1.442695, %v72_v4  ;;  %v76_v7 = vmul.f32 1.442695, %v73_v5  ;;  %v82_v44 = vsub.f32 %v78_v36, %v80_v37  ;;  %v83_v45 = vsub.f32 %v79_v38, %v81_v39 }
  0x2c   :  { %p261_p5 = por %p260_p4, %p259_p3 }
  0x2d   :  { %194 = vpow2.f32 %v74_v6 }
  0x2e   :  { %196 = vpow2.f32 %v76_v7  ;;  %p262_p6 = pnand %p261_p5, %p255_p2 }
  0x37   :  { %v195_v8 = vpop.eup %194 }
  0x38   :  { %v197_v9 = vpop.eup %196  ;;  %v84_v10 = vadd.f32 1.0, %v195_v8  ;;  %v106_v12 = vsel %vm104_vm0, 1.0, %v195_v8  ;;  %v87_v22 = vmul.f32 -0.5, %v195_v8  ;;  %v90_v31 = vand.u32 2147483647, %v195_v8 }
  0x39   :  { %v93_v11 = vadd.f32 1.0, %v197_v9  ;;  %v107_v13 = vsel %vm105_vm1, 1.0, %v197_v9  ;;  %v96_v24 = vmul.f32 -0.5, %v197_v9  ;;  %v99_v35 = vand.u32 2147483647, %v197_v9 }
  0x3a   :  { %198 = vrcp.f32 %v84_v10  ;;  %v88_v28 = vadd.f32 1.0, %v87_v22  ;;  %vm91_vm2 = vcmp.lt.f32.partialorder %v90_v31, 0.0004427343 }
  0x3b   :  { %200 = vrcp.f32 %v93_v11  ;;  %v97_v32 = vadd.f32 1.0, %v96_v24  ;;  %vm100_vm3 = vcmp.lt.f32.partialorder %v99_v35, 0.0004427343 }
  0x3c   :  { %202 = vlog2.f32 %v84_v10  ;;  %v89_v41 = vmul.f32 %v195_v8, %v88_v28 }
  0x3d   :  { %204 = vlog2.f32 %v93_v11  ;;  %v98_v43 = vmul.f32 %v197_v9, %v97_v32 }
  0x44   :  { %v199_v14 = vpop.eup %198 }
  0x45   :  { %v201_v16 = vpop.eup %200  ;;  %v111_v18 = vmul.f32 %v199_v14, %v106_v12 }
  0x46   :  { %v113_v19 = vmul.f32 %v201_v16, %v107_v13  ;;  %v203_v30 = vpop.eup %202 }
  0x47   :  { %v114_v20 = vsub.f32 %v111_v18, %v68_v15  ;;  %v205_v34 = vpop.eup %204  ;;  %v86_v40 = vmul.f32 0.6931472, %v203_v30 }
  0x48   :  { %v115_v21 = vsub.f32 %v113_v19, %v69_v17  ;;  %v95_v42 = vmul.f32 0.6931472, %v205_v34 }
  0x49   :  { %v186_v23 = vadd.f32 -1.0, %v114_v20  ;;  %v92_v46 = vsel %vm91_vm2, %v89_v41, %v86_v40 }
  0x4a   :  { %v187_v25 = vadd.f32 -1.0, %v115_v21  ;;  %v101_v47 = vsel %vm100_vm3, %v98_v43, %v95_v42  ;;  %v102_v48 = vadd.f32 %v92_v46, %v82_v44 }
  0x4b   :  { %v118_v26 = vmul.f32 19.96008, %v186_v23  ;;  %v103_v50 = vadd.f32 %v101_v47, %v83_v45 }
  0x4c   :  { %v119_v27 = vmul.f32 19.96008, %v187_v25 }
  0x4d   :  { %v120_v29 = vmul.f32 1.442695, %v118_v26 }
  0x4e   :  { %v122_v33 = vmul.f32 1.442695, %v119_v27 }
  0x4f   :  { %206 = vpow2.f32 %v120_v29 }
  0x50   :  { %208 = vpow2.f32 %v122_v33 }
  0x59   :  { %v207_v49 = vpop.eup %206 }
  0x5a   :  { %v209_v51 = vpop.eup %208  ;;  %v124_v52 = vsub.f32 1.0, %v207_v49 }
  0x5b   :  { %v125_v53 = vsub.f32 1.0, %v209_v51 }
  0x5c   :  { %v126_v54 = vmul.f32 %v124_v52, %v102_v48 }
  0x5d   :  { %v127_v55 = vmul.f32 %v125_v53, %v103_v50 }
  0x5f   :  { %v135_v56 = vadd.f32 %v127_v55, %v126_v54 }
  0x61   :  { %137 = vst [vmem:[#allocation7] sm:$0xff] %v135_v56 }
  0x62   :  { %265 = shalt.err (!%p262_p6)
}
  0x63   :  { %s266_s10 = scalar_lea.hbm %s340_s2, 128 }
  0x64   :  { %p267_p7 = scmp.ne.s32.totalorder %s340_s2, %s266_s10  ;;  %p270_p8 = scmp.lt.u32.totalorder %s266_s10, %s340_s2 }
  0x66   :  { %p272_p9 = pnand %p270_p8, %p267_p7 }
  0x68   :  { %275 = shalt.err (!%p272_p9)
}
  0x69   :  { %175 = dma.vmem_to_hbm [thread:$0]  %s173_s6, 128, %s340_s2, [#allocation4]  }
  0x6a   :  { %280 = dma.done.wait [#allocation4], 128  }
  0x6b   :  { %281 = vsyncadd [#allocation4], 4294967168 }
  0x6c   :  { %179 = vsyncpa [#allocation3], 1 }
  0x6d   :  { %180 = vsyncpa [#allocation6], 1 }
  0x6e   :  { %181 = vsyncpa [#allocation4], 1 }

</bundles_post_ra>
